<compile_context>
chip_gen: v6e
topology: v6e:2x2x1
jax: 0.10.0
libtpu: 0.0.40
codegen_flags: <defaults>
</compile_context>

<pallas_src>
import functools

import jax
import jax.numpy as jnp
from jax import lax
from jax.experimental import pallas as pl
from jax.experimental.pallas import tpu as pltpu


def _round_up(x, m):
    return ((x + m - 1) // m) * m


def _device_kind():
    try:
        return jax.devices()[0].device_kind.lower()
    except Exception:  # pragma: no cover
        return ""


# NT contraction: contract lhs dim 1 with rhs dim 1 (i.e. A @ B^T), no batch dims.
_NT_DIMS = (((1,), (1,)), ((), ()))


def _rbm_kernel(a_ref, v_ref, w_ref, b_ref, mask_ref, out_ref, *, transc_bf16):
    """One (batch-tile i, hidden-tile h) grid step.

    a_ref:    (1, V)   f32   visible bias row (grid-invariant)
    v_ref:    (TB, V)  bf16  batch tile of +/-1 spins
    w_ref:    (V, TH)  bf16  hidden-column slice of W
    b_ref:    (1, TH)  f32   hidden-bias slice
    mask_ref: (1, TH)  f32   1.0 for real hidden units, 0.0 for lane padding
    out_ref:  (1, TB)  f32   log-psi row, resident across the hidden grid axis
    """
    h_idx = pl.program_id(1)

    v = v_ref[...]
    w = w_ref[...]
    b = b_ref[...]
    mask = mask_ref[...]

    # Hidden activation for this H tile (MXU contraction, f32 accumulation).
    hact = jnp.dot(v, w, preferred_element_type=jnp.float32) + b        # (TB, TH)

    # log(2*cosh(h)) = |h| + log1p(exp(-2|h|))   (numerically stable)
    ah = jnp.abs(hact)
    if transc_bf16:
        # EUP-bound phase: transcendentals in bf16 (native bf16 EUP on v6e/v7x);
        # the |h| term and the reduction stay in f32.
        soft = jnp.log1p(jnp.exp((-2.0 * ah).astype(jnp.bfloat16)))
        log2cosh = ah + soft.astype(jnp.float32)                         # (TB, TH)
    else:
        log2cosh = ah + jnp.log1p(jnp.exp(-2.0 * ah))                    # (TB, TH)

    # Masked lane-dense reduction over this hidden tile: (1,TH) x (TB,TH)^T ->
    # (1,TB).  The mask row both zeroes the lane padding of H and replaces the
    # previously in-kernel ones-splat (hoisted to a tiny input).
    hidden_row = lax.dot_general(mask, log2cosh, _NT_DIMS,
                                 preferred_element_type=jnp.float32)     # (1, TB)

    @pl.when(h_idx == 0)
    def _():
        # Visible term only once per batch tile; upcasting +/-1 spins is exact.
        visible_row = lax.dot_general(a_ref[...], v.astype(jnp.float32), _NT_DIMS,
                                      preferred_element_type=jnp.float32)
        out_ref[...] = visible_row + hidden_row

    @pl.when(h_idx != 0)
    def _():
        out_ref[...] += hidden_row


def rbm_forward_batched(v_batch, a, b, W, shift_invariant=False,
                        batch_tile=None, h_tile=512,
                        weight_dtype=jnp.bfloat16, transc_bf16=None):
    """log psi for a batch of spin configurations.

    v_batch: (B, V) array of +/-1. Returns (B,) float32.
    """
    v_batch = jnp.asarray(v_batch)
    if v_batch.ndim == 1:
        v_batch = v_batch[None, :]
    B, V = int(v_batch.shape[0]), int(v_batch.shape[1])
    H = int(b.shape[0])

    # -------- per-generation defaults ------------------------------------
    kind = _device_kind()
    newer = ("v6" in kind) or ("v7" in kind)
    if batch_tile is None:
        batch_tile = 256 if newer else 128      # 2x256^2 MXU vs 4x128^2
    if transc_bf16 is None:
        transc_bf16 = newer                     # v5e EUP has no bf16 path
    if "v7" in kind:
        vmem_limit = 48 * 1024 * 1024           # 64 MiB physical, leave headroom
    elif ("v5" in kind) or ("v6" in kind):
        vmem_limit = 96 * 1024 * 1024           # 128 MiB physical
    else:
        vmem_limit = None                       # unknown chip: keep default

    # -------- batch tiling ------------------------------------------------
    if B <= 128:
        # Single output block covering the whole (small) padded batch; the
        # full-array last dim satisfies the (8,128) block constraint.
        tile = _round_up(max(B, 8), 8)
        B_pad = tile
    else:
        # Multiple of 128 (unmasked lane-dense stores) and at least 2 batch
        # steps so the "parallel" axis can shard across v7x's two TensorCores.
        tile = min(int(batch_tile), _round_up((B + 1) // 2, 128))
        tile = max(tile, 128)
        B_pad = _round_up(B, tile)

    # -------- hidden tiling (H-reduction grid axis) ------------------------
    h_tile = max(128, _round_up(int(h_tile), 128))
    if H <= h_tile:
        th = _round_up(H, 128)
        H_pad = th
    else:
        th = h_tile
        H_pad = _round_up(H, th)

    compute_dtype = jnp.dtype(weight_dtype)

    # -------- operand preparation ------------------------------------------
    v_in = v_batch.astype(compute_dtype)        # +/-1 is exact in bf16
    if B_pad != B:
        v_in = jnp.pad(v_in, ((0, B_pad - B), (0, 0)))

    if shift_invariant:
        # a is a scalar; a * sum(v) == dot(broadcast(a), v).  W is stored (H, V)
        # in the module; transpose ONCE here so the kernel never transposes the
        # streamed W tiles.
        a_row = jnp.broadcast_to(jnp.reshape(a, (1, 1)).astype(jnp.float32), (1, V))
        w_vh = jnp.transpose(W)                 # (V, H)
    else:
        a_row = jnp.reshape(a, (1, V)).astype(jnp.float32)
        w_vh = W                                # already (V, H)
    w_in = w_vh.astype(compute_dtype)
    b_row = jnp.reshape(b, (1, H)).astype(jnp.float32)
    if H_pad != H:
        w_in = jnp.pad(w_in, ((0, 0), (0, H_pad - H)))
        b_row = jnp.pad(b_row, ((0, 0), (0, H_pad - H)))
    # Ones for real hidden units, zeros for lane padding (padded columns would
    # otherwise each contribute log(2) to the sum).
    mask_row = (jnp.arange(H_pad, dtype=jnp.int32) < H).astype(jnp.float32)[None, :]

    grid = (B_pad // tile, H_pad // th)
    n_btiles = grid[0]
    itemsize = int(compute_dtype.itemsize)

    cost = pl.CostEstimate(
        flops=int(2 * B_pad * V * H_pad + 2 * B_pad * H_pad
                  + 2 * B_pad * V + 6 * B_pad * H_pad),
        transcendentals=int(2 * B_pad * H_pad),
        bytes_accessed=int(B_pad * V * itemsize              # v (fetched once per batch tile)
                           + n_btiles * V * H_pad * itemsize  # W streamed per batch tile
                           + n_btiles * H_pad * 8             # b + mask
                           + V * 4 + B_pad * 4),
    )

    cp_kwargs = dict(dimension_semantics=("parallel", "arbitrary"))
    if vmem_limit is not None:
        cp_kwargs["vmem_limit_bytes"] = int(vmem_limit)

    def run(use_bf16_transc):
        kernel = functools.partial(_rbm_kernel, transc_bf16=use_bf16_transc)
        return pl.pallas_call(
            kernel,
            out_shape=jax.ShapeDtypeStruct((1, B_pad), jnp.float32),
            grid=grid,
            in_specs=[
                pl.BlockSpec((1, V), lambda i, h: (0, 0)),      # a (grid-invariant)
                pl.BlockSpec((tile, V), lambda i, h: (i, 0)),   # v batch tile
                pl.BlockSpec((V, th), lambda i, h: (0, h)),     # W hidden-column tile
                pl.BlockSpec((1, th), lambda i, h: (0, h)),     # b hidden tile
                pl.BlockSpec((1, th), lambda i, h: (0, h)),     # hidden mask / ones row
            ],
            out_specs=pl.BlockSpec((1, tile), lambda i, h: (0, i)),
            compiler_params=pltpu.CompilerParams(**cp_kwargs),
            cost_estimate=cost,
        )(a_row, v_in, w_in, b_row, mask_row)

    if transc_bf16:
        try:
            out = run(True)
        except Exception:  # fall back for chips without a bf16 transcendental path
            out = run(False)
    else:
        out = run(False)

    return out[0, :B]


def rbm_forward(v, a, b, W, shift_invariant=False):
    """Single-configuration forward (matches the PyTorch module). Scalar f32."""
    v2 = jnp.reshape(jnp.asarray(v), (1, -1))
    return rbm_forward_batched(v2, a, b, W, shift_invariant)[0]


def rbm_psi(v, a, b, W, shift_invariant=False):
    """Wave-function amplitude psi(v) = exp(forward(v))."""
    return jnp.exp(rbm_forward(v, a, b, W, shift_invariant))


def _reference_forward_batched(v_batch, a, b, W, shift_invariant=False):
    v = v_batch.astype(jnp.float32)
    if shift_invariant:
        visible = a.astype(jnp.float32)[0] * jnp.sum(v, axis=1)
        h = b.astype(jnp.float32)[None, :] + v @ W.astype(jnp.float32).T
    else:
        visible = v @ a.astype(jnp.float32)
        h = b.astype(jnp.float32)[None, :] + v @ W.astype(jnp.float32)
    return visible + jnp.sum(jnp.log(2.0 * jnp.cosh(h)), axis=1)


if __name__ == "__main__":
    key = jax.random.PRNGKey(0)
    (k_v, k_a, k_b, k_w, k_b2, k_w2,
     k_v2, k_a2, k_b3, k_w3) = jax.random.split(key, 10)

    num_visible, num_hidden, batch = 16, 32, 8

    # spin configurations with values +/-1
    v_batch = jnp.where(
        jax.random.bernoulli(k_v, 0.5, (batch, num_visible)), 1.0, -1.0
    ).astype(jnp.float32)

    # --- shift_invariant=False parameters ---
    a = (jax.random.normal(k_a, (num_visible,)) * 0.01).astype(jnp.float32)
    b = (jax.random.normal(k_b, (num_hidden,)) * 0.01).astype(jnp.float32)
    W = (jax.random.normal(k_w, (num_visible, num_hidden)) * 0.01).astype(jnp.float32)

    out = jax.block_until_ready(rbm_forward_batched(v_batch, a, b, W))
    ref = _reference_forward_batched(v_batch, a, b, W)
    assert bool(jnp.allclose(out, ref, rtol=1e-2, atol=5e-3)), (out, ref)

    # single-sample path (matches the PyTorch forward signature) + psi
    out1 = jax.block_until_ready(rbm_forward(v_batch[0], a, b, W))
    assert bool(jnp.allclose(out1, ref[0], rtol=1e-2, atol=5e-3)), (out1, ref[0])
    _ = jax.block_until_ready(rbm_psi(v_batch[0], a, b, W))

    # --- shift_invariant=True parameters ---
    a_si = (jax.random.normal(k_a, (1,)) * 0.01).astype(jnp.float32)
    b_si = (jax.random.normal(k_b2, (num_hidden,)) * 0.01).astype(jnp.float32)
    W_si = (jax.random.normal(k_w2, (num_hidden, num_visible)) * 0.01).astype(jnp.float32)

    out_si = jax.block_until_ready(
        rbm_forward_batched(v_batch, a_si, b_si, W_si, shift_invariant=True))
    ref_si = _reference_forward_batched(v_batch, a_si, b_si, W_si, shift_invariant=True)
    assert bool(jnp.allclose(out_si, ref_si, rtol=1e-2, atol=5e-3)), (out_si, ref_si)

    # --- multi-tile path: batch > 128 and H > h_tile exercise both grid axes
    #     (batch-parallel tiles + H-reduction accumulation + mask padding).
    V2, H2, B2 = 32, 640, 260
    v2 = jnp.where(jax.random.bernoulli(k_v2, 0.5, (B2, V2)), 1.0, -1.0
                   ).astype(jnp.float32)
    a2 = (jax.random.normal(k_a2, (V2,)) * 0.01).astype(jnp.float32)
    b2 = (jax.random.normal(k_b3, (H2,)) * 0.01).astype(jnp.float32)
    W2 = (jax.random.normal(k_w3, (V2, H2)) * 0.01).astype(jnp.float32)

    out2 = jax.block_until_ready(rbm_forward_batched(v2, a2, b2, W2, h_tile=256))
    ref2 = _reference_forward_batched(v2, a2, b2, W2)
    assert bool(jnp.allclose(out2, ref2, rtol=1e-2, atol=5e-3)), float(
        jnp.max(jnp.abs(out2 - ref2)))

    print("KERNEL_OK")
</pallas_src>

<mosaic_0001>
module attributes {stable_mosaic.version = 11 : i64} {
  func.func @_rbm_kernel(%arg0: i32, %arg1: i32, %arg2: memref<1x16xf32, #tpu.memory_space<vmem>>, %arg3: memref<8x16xbf16, #tpu.memory_space<vmem>>, %arg4: memref<16x128xbf16, #tpu.memory_space<vmem>>, %arg5: memref<1x128xf32, #tpu.memory_space<vmem>>, %arg6: memref<1x128xf32, #tpu.memory_space<vmem>>, %arg7: memref<1x8xf32, #tpu.memory_space<vmem>>) attributes {dimension_semantics = [#tpu.dimension_semantics<parallel>, #tpu.dimension_semantics<arbitrary>], iteration_bounds = array<i64: 1, 1>, scalar_prefetch = 0 : i64, scratch_operands = 0 : i64, tpu.core_type = #tpu.core_type<tc>, window_params = [{pipeline_mode = #tpu.pipeline_mode<synchronous>, transform_indices = @transform_0, window_bounds = array<i64: 1, 16>}, {transform_indices = @transform_1, window_bounds = array<i64: 8, 16>}, {transform_indices = @transform_2, window_bounds = array<i64: 16, 128>}, {transform_indices = @transform_3, window_bounds = array<i64: 1, 128>}, {transform_indices = @transform_4, window_bounds = array<i64: 1, 128>}, {transform_indices = @transform_5, window_bounds = array<i64: 1, 8>}]} {
    %c0 = arith.constant 0 : index
    %c0_0 = arith.constant 0 : index
    %0 = vector.load %arg3[%c0, %c0_0] : memref<8x16xbf16, #tpu.memory_space<vmem>>, vector<8x16xbf16>
    %c0_1 = arith.constant 0 : index
    %c0_2 = arith.constant 0 : index
    %1 = vector.load %arg4[%c0_1, %c0_2] : memref<16x128xbf16, #tpu.memory_space<vmem>>, vector<16x128xbf16>
    %c0_3 = arith.constant 0 : index
    %c0_4 = arith.constant 0 : index
    %2 = vector.load %arg5[%c0_3, %c0_4] : memref<1x128xf32, #tpu.memory_space<vmem>>, vector<1x128xf32>
    %c0_5 = arith.constant 0 : index
    %c0_6 = arith.constant 0 : index
    %3 = vector.load %arg6[%c0_5, %c0_6] : memref<1x128xf32, #tpu.memory_space<vmem>>, vector<1x128xf32>
    %cst = arith.constant dense<0.000000e+00> : vector<8x128xf32>
    %4 = tpu.matmul %0, %1, %cst {dimension_numbers = #tpu.dot_dimension_numbers<[1], [0], [0], [1], [0, 0, 1, 1], [], []>} : vector<8x16xbf16>, vector<16x128xbf16>, vector<8x128xf32> -> vector<8x128xf32>
    %5 = vector.broadcast %2 : vector<1x128xf32> to vector<8x128xf32>
    %6 = arith.addf %4, %5 : vector<8x128xf32>
    %7 = math.absf %6 : vector<8x128xf32>
    %cst_7 = arith.constant -2.000000e+00 : f32
    %8 = vector.broadcast %cst_7 : f32 to vector<8x128xf32>
    %9 = arith.mulf %8, %7 : vector<8x128xf32>
    %10 = math.exp %9 : vector<8x128xf32>
    %11 = math.log1p %10 : vector<8x128xf32>
    %12 = arith.addf %7, %11 : vector<8x128xf32>
    %cst_8 = arith.constant dense<0.000000e+00> : vector<1x8xf32>
    %13 = tpu.matmul %3, %12, %cst_8 {dimension_numbers = #tpu.dot_dimension_numbers<[1], [1], [0], [0], [0, 0, 1, 0], [], []>} : vector<1x128xf32>, vector<8x128xf32>, vector<1x8xf32> -> vector<1x8xf32>
    %c0_i32 = arith.constant 0 : i32
    %14 = arith.cmpi eq, %arg1, %c0_i32 : i32
    %15 = arith.extui %14 : i1 to i32
    %c0_i32_9 = arith.constant 0 : i32
    %16 = arith.cmpi ne, %15, %c0_i32_9 : i32
    scf.if %16 {
      %c0_12 = arith.constant 0 : index
      %c0_13 = arith.constant 0 : index
      %20 = vector.load %arg2[%c0_12, %c0_13] : memref<1x16xf32, #tpu.memory_space<vmem>>, vector<1x16xf32>
      %21 = arith.extf %0 : vector<8x16xbf16> to vector<8x16xf32>
      %cst_14 = arith.constant dense<0.000000e+00> : vector<1x8xf32>
      %22 = tpu.matmul %20, %21, %cst_14 {dimension_numbers = #tpu.dot_dimension_numbers<[1], [1], [0], [0], [0, 0, 1, 0], [], []>} : vector<1x16xf32>, vector<8x16xf32>, vector<1x8xf32> -> vector<1x8xf32>
      %23 = arith.addf %22, %13 : vector<1x8xf32>
      %c0_15 = arith.constant 0 : index
      %c0_16 = arith.constant 0 : index
      %24 = vector.load %arg7[%c0_15, %c0_16] : memref<1x8xf32, #tpu.memory_space<vmem>>, vector<1x8xf32>
      tpu.vector_store %arg7[%c0_15, %c0_16], %23 {strides = array<i32>} : memref<1x8xf32, #tpu.memory_space<vmem>>, vector<1x8xf32>,
    } else {
    }
    %c0_i32_10 = arith.constant 0 : i32
    %17 = arith.cmpi ne, %arg1, %c0_i32_10 : i32
    %18 = arith.extui %17 : i1 to i32
    %c0_i32_11 = arith.constant 0 : i32
    %19 = arith.cmpi ne, %18, %c0_i32_11 : i32
    scf.if %19 {
      %c0_12 = arith.constant 0 : index
      %c0_13 = arith.constant 0 : index
      %20 = vector.load %arg7[%c0_12, %c0_13] : memref<1x8xf32, #tpu.memory_space<vmem>>, vector<1x8xf32>
      %21 = arith.addf %20, %13 : vector<1x8xf32>
      %c0_14 = arith.constant 0 : index
      %c0_15 = arith.constant 0 : index
      %22 = vector.load %arg7[%c0_14, %c0_15] : memref<1x8xf32, #tpu.memory_space<vmem>>, vector<1x8xf32>
      tpu.vector_store %arg7[%c0_14, %c0_15], %21 {strides = array<i32>} : memref<1x8xf32, #tpu.memory_space<vmem>>, vector<1x8xf32>,
    } else {
    }
    return
  }
  func.func @transform_0(%arg0: i32, %arg1: i32) -> (i32, i32) {
    %c0_i32 = arith.constant 0 : i32
    %c0_i32_0 = arith.constant 0 : i32
    %c0_i32_1 = arith.constant 0 : i32
    return %c0_i32, %c0_i32_0 : i32, i32
  }
  func.func @transform_1(%arg0: i32, %arg1: i32) -> (i32, i32) {
    %c0_i32 = arith.constant 0 : i32
    %c0_i32_0 = arith.constant 0 : i32
    return %arg0, %c0_i32 : i32, i32
  }
  func.func @transform_2(%arg0: i32, %arg1: i32) -> (i32, i32) {
    %c0_i32 = arith.constant 0 : i32
    %c0_i32_0 = arith.constant 0 : i32
    return %c0_i32, %arg1 : i32, i32
  }
  func.func @transform_3(%arg0: i32, %arg1: i32) -> (i32, i32) {
    %c0_i32 = arith.constant 0 : i32
    %c0_i32_0 = arith.constant 0 : i32
    return %c0_i32, %arg1 : i32, i32
  }
  func.func @transform_4(%arg0: i32, %arg1: i32) -> (i32, i32) {
    %c0_i32 = arith.constant 0 : i32
    %c0_i32_0 = arith.constant 0 : i32
    return %c0_i32, %arg1 : i32, i32
  }
  func.func @transform_5(%arg0: i32, %arg1: i32) -> (i32, i32) {
    %c0_i32 = arith.constant 0 : i32
    %c0_i32_0 = arith.constant 0 : i32
    return %c0_i32, %arg0 : i32, i32
  }
}

</mosaic_0001>

<bundles_post_ra>
// kernel: tpu_custom_call.1
= control target key start
LH: loop header
LB: loop body
LE: loop exit
PB: predicated region body
PF: predicated region fallthrough
CT: control target
= control target key end

     0   :  { %10 = vsyncpa [#allocation3], 0  ;;  %s500_s0 = inlined_call_operand.hbm [shape: f32[1,16], index: 0, kind: input, shape index: {}]   ;;  %s501_s1 = inlined_call_operand.hbm [shape: bf16[8,16], index: 1, kind: input, shape index: {}]   ;;  %s502_s2 = inlined_call_operand.hbm [shape: bf16[16,128], index: 2, kind: input, shape index: {}]   ;;  %s503_s3 = inlined_call_operand.vmem [shape: f32[1,128], index: 3, kind: input, shape index: {}]   ;;  %s504_s4 = inlined_call_operand.vmem [shape: f32[1,128], index: 4, kind: input, shape index: {}]   ;;  %s505_s5 = inlined_call_operand.hbm [shape: f32[1,8], index: 5, kind: output, shape index: {}]  }
   0x1   :  { %11 = vsyncpa [#allocation6], 0 }
   0x2   :  { %12 = vsyncpa [#allocation4], 0  ;;  %s438_s18 = smov [#allocation5]   ;;  %s439_s20 = smov [#allocation2]  }
   0x3   :  { %s29_s19 = sshll.u32 %s438_s18, 4  ;;  %s19_s21 = sshll.u32 %s439_s20, 4  ;;  %s30_s19 = int_to_ptr.vmem [resolvable:$true] %s29_s19  ;;  %s20_s21 = int_to_ptr.vmem [resolvable:$true] %s19_s21 }
   0x4   :  { %s360_s22 = scalar_lea.vmem %s30_s19, 64  ;;  %p365_p1 = scmp.lt.s32.totalorder %s30_s19, %s30_s19 }
   0x5   :  { %p361_p0 = scmp.ne.s32.totalorder %s30_s19, %s360_s22  ;;  %p366_p2 = scmp.lt.s32.totalorder %s360_s22, %s360_s22 }
   0x7   :  { %p367_p3 = por %p366_p2, %p365_p1 }
   0x9   :  { %p368_p4 = pnand %p367_p3, %p361_p0 }
   0xb   :  { %371 = shalt.err (!%p368_p4)
}
   0xc   :  { %32 = dma.hbm_to_vmem [thread:$0]  %s501_s1, 64, %s30_s19, [#allocation6]  }
   0xd   :  { %s380_s25 = scalar_lea.vmem %s20_s21, 16  ;;  %s384_s26 = scalar_lea.vmem %s20_s21, 32 }
   0xe   :  { %p381_p5 = scmp.ne.s32.totalorder %s20_s21, %s380_s25  ;;  %p385_p6 = scmp.lt.s32.totalorder %s20_s21, %s20_s21 }
   0xf   :  { %p386_p7 = scmp.lt.s32.totalorder %s384_s26, %s380_s25 }
  0x11   :  { %p387_p8 = por %p386_p7, %p385_p6 }
  0x13   :  { %p388_p9 = pnand %p387_p8, %p381_p5 }
  0x15   :  { %391 = shalt.err (!%p388_p9)
}
  0x16   :  { %22 = dma.hbm_to_vmem [thread:$0]  %s500_s0, 16, %s20_s21, [#allocation3]  }
  0x17   :  { %s440_s29 = smov [#allocation7]  }
  0x18   :  { %s38_s30 = sshll.u32 %s440_s29, 4  ;;  %s39_s30 = int_to_ptr.vmem [resolvable:$true] %s38_s30 }
  0x19   :  { %s400_s6 = scalar_lea.vmem %s39_s30, 128  ;;  %p405_p11 = scmp.lt.s32.totalorder %s39_s30, %s39_s30 }
  0x1a   :  { %p401_p10 = scmp.ne.s32.totalorder %s39_s30, %s400_s6  ;;  %p406_p12 = scmp.lt.s32.totalorder %s400_s6, %s400_s6 }
  0x1c   :  { %p407_p13 = por %p406_p12, %p405_p11 }
  0x1e   :  { %p408_p0 = pnand %p407_p13, %p401_p10 }
  0x20   :  { %411 = shalt.err (!%p408_p0)
}
  0x21   :  { %s441_s1 = smov 64   ;;  %s442_s7 = smov 4  }
  0x22   :  { %44 = dma.hbm_to_vmem [thread:$0]  %s502_s2, 128, %s39_s30, [#allocation6], %s441_s1, %s441_s1, %s442_s7  }
  0x23   :  { %432 = dma.done.wait [#allocation3], 16  }
  0x24   :  { %433 = vsyncadd [#allocation3], 4294967280 }
  0x25   :  { %434 = dma.done.wait [#allocation6], 192  }
  0x26   :  { %435 = vsyncadd [#allocation6], 4294967104  ;;  %v443_v0 = vmov 0.0   ;;  %vm444_vm0 = vmmov 0   ;;  %v347_v1 = vld [vmem:[#allocation7] sm:$0xff]   ;;  %vm76_vm1 = vcmask 130048  }
  0x27   :  { %323 = vmatprep.subr.bf16.mxu0 %v443_v0  ;;  %325 = vmatprep.mubr.msk.bf16.mxu0 %vm444_vm0, %v443_v0  ;;  %v59_v2 = vld [vmem:[#allocation5] sm:$0xf]  ;;  %v312_v3 = vld [vmem:[%s503_s3] ss:$0 sm:$0xff]  ;;  %s445_s11 = smov [#allocation8]   ;;  %vm286_vm3 = vcmask 57344  }
  0x28   :  { %329 = vmatprep.subr.mxu1 %v443_v0  ;;  %331 = vmatprep.mubr.msk.f32.mxu1 %vm444_vm0, %v443_v0  ;;  %v209_v22 = vunpack.c.l.bf16 %v59_v2  ;;  %v63_v23 = vld [vmem:[%s504_s4] sm:$0x1]  ;;  %s302_s12 = sshll.u32 %s445_s11, 4  ;;  %s303_s12 = int_to_ptr.vmem [resolvable:$true] %s302_s12 }
  0x29   :  { %324 = vmatpush3.bf16.msra.mxu0 %v347_v1  ;;  %v208_v24 = vld [vmem:[#allocation2] sm:$0x1]  ;;  %s412_s4 = scalar_lea.vmem %s303_s12, 16  ;;  %s416_s13 = scalar_lea.vmem %s303_s12, 32 }
  0x2a   :  { %p413_p1 = scmp.ne.s32.totalorder %s303_s12, %s412_s4  ;;  %p417_p2 = scmp.lt.s32.totalorder %s303_s12, %s303_s12 }
  0x2b   :  { %p418_p3 = scmp.lt.s32.totalorder %s416_s13, %s412_s4 }
  0x2c   :  { %326 = vmatmul.mubr.msk.bf16.vlgmr.msra.gmra.mxu0 %vm76_vm1, %v59_v2 }
  0x2d   :  { %p419_p4 = por %p418_p3, %p417_p2 }
  0x2f   :  { %p420_p5 = pnand %p419_p4, %p413_p1 }
  0xec   :  { %v114_v4 = vpop.f32.mrf.mxu0 }
  0xed   :  { %v115_v5 = vadd.f32 %v312_v3, %v114_v4 }
  0xee   :  { %v327_v6 = vpop.f32.mrf.mxu0 }
  0xef   :  { %v120_v7 = vand.u32 2147483647, %v115_v5 }
  0xf0   :  { %v117_v8 = vpop.f32.mrf.mxu0 }
  0xf1   :  { %v121_v9 = vmul.f32 -2.0, %v120_v7 }
  0xf2   :  { %v328_v10 = vpop.f32.mrf.mxu0 }
  0xf3   :  { %v122_v11 = vmul.f32 1.442695, %v121_v9 }
  0xf5   :  { %348 = vpow2.f32 %v122_v11 }
 0x102   :  { %v349_v12 = vpop.eup %348 }
 0x103   :  { %v124_v13 = vadd.f32 1.0, %v349_v12  ;;  %v127_v14 = vmul.f32 -0.5, %v349_v12  ;;  %v130_v16 = vand.u32 2147483647, %v349_v12 }
 0x105   :  { %350 = vlog2.f32 %v124_v13  ;;  %v128_v15 = vadd.f32 1.0, %v127_v14  ;;  %vm131_vm2 = vcmp.lt.f32.partialorder %v130_v16, 0.0004427343 }
 0x107   :  { %v129_v19 = vmul.f32 %v349_v12, %v128_v15 }
 0x112   :  { %v351_v17 = vpop.eup %350 }
 0x113   :  { %v126_v18 = vmul.f32 0.6931472, %v351_v17 }
 0x115   :  { %v132_v20 = vsel %vm131_vm2, %v129_v19, %v126_v18 }
 0x116   :  { %v133_v21 = vadd.f32 %v132_v20, %v120_v7 }
 0x118   :  { %330 = vmatpush3.xpose.msra.mxu1 %v133_v21 }
 0x119   :  { %334 = vmatprep.subr.mxu1 %v443_v0 }
 0x11b   :  { %332 = vmatmul.mubr.f32.vlgmr.msra.gmra.mxu1 %v63_v23 }
 0x11c   :  { %335 = vmatpush3.xpose.msk.msra.mxu1 %vm76_vm1, %v209_v22  ;;  %336 = vmatprep.mubr.msk.f32.mxu1 %vm444_vm0, %v443_v0 }
 0x11f   :  { %337 = vmatmul.mubr.msk.f32.vlgmr.msra.gmra.mxu1 %vm76_vm1, %v208_v24 }
 0x1db   :  { %v200_v25 = vpop.f32.mrf.mxu1 }
 0x1dd   :  { %v333_v26 = vpop.f32.mrf.mxu1 }
 0x1df   :  { %v282_v27 = vpop.f32.mrf.mxu1 }
 0x1e0   :  { %v283_v28 = vadd.f32 %v282_v27, %v200_v25 }
 0x1e1   :  { %v338_v29 = vpop.f32.mrf.mxu1 }
 0x1e2   :  { %287 = vst.msk [vmem:[#allocation8] sm:$0x1] %vm286_vm3, %v283_v28 }
 0x1e3   :  { %423 = shalt.err (!%p420_p5)
}
 0x1e4   :  { %305 = dma.vmem_to_hbm [thread:$0]  %s303_s12, 16, %s505_s5, [#allocation4]  }
 0x1e5   :  { %436 = dma.done.wait [#allocation4], 16  }
 0x1e6   :  { %437 = vsyncadd [#allocation4], 4294967280 }
 0x1e7   :  { %309 = vsyncpa [#allocation3], 1 }
 0x1e8   :  { %310 = vsyncpa [#allocation6], 1 }
 0x1e9   :  { %311 = vsyncpa [#allocation4], 1 }

</bundles_post_ra>
